<compile_context>
chip_gen: v7x
topology: tpu7x:2x2x1
jax: 0.10.0
libtpu: 0.0.40
codegen_flags: <defaults>
</compile_context>

<pallas_src>
import jax
import jax.numpy as jnp
from jax.experimental import pallas as pl
from jax.experimental.pallas import tpu as pltpu


def _cdiv(a, b):
    return -(-a // b)


def _round_up(x, m):
    return _cdiv(x, m) * m


def _make_attention_kernel(*, block_e, l_enc, mask_e, acc_in_out):
    neg_inf = float("-inf")

    def kernel(dec_ref, enc_ref, out_ref, m_ref, l_ref, *scratch):
        # dec_ref: (Bt, block_d, H)  enc_ref: (Bt, block_e, H)
        # out_ref: (Bt, block_d, H)  m/l: (Bt, block_d, 1) f32
        acc_ref = out_ref if acc_in_out else scratch[0]
        kv = pl.program_id(2)

        @pl.when(kv == 0)
        def _init():
            m_ref[...] = jnp.full_like(m_ref, neg_inf)
            l_ref[...] = jnp.zeros_like(l_ref)
            acc_ref[...] = jnp.zeros_like(acc_ref)

        dec = dec_ref[...]
        enc = enc_ref[...]

        if mask_e:
            # Zero enc rows past L_enc so the PV matmul never touches OOB
            # garbage (static branch: only emitted for ragged L_enc tails).
            e_base = kv * block_e
            row_ids = jax.lax.broadcasted_iota(jnp.int32, (block_e, 1), 0) + e_base
            enc = jnp.where(row_ids[None, :, :] < l_enc, enc, jnp.zeros_like(enc))

        # Scores for this L_enc tile: (Bt, block_d, block_e); contract on H,
        # no materialized transposes.
        s = jnp.einsum("bdh,beh->bde", dec, enc,
                       preferred_element_type=jnp.float32)

        if mask_e:
            e_base = kv * block_e
            col_ids = jax.lax.broadcasted_iota(jnp.int32, (1, block_e), 1) + e_base
            s = jnp.where(col_ids[None, :, :] < l_enc, s, neg_inf)

        # Online softmax over the L_enc (last) axis -- all math in f32.
        m_prev = m_ref[...]
        m_new = jnp.maximum(m_prev, jnp.max(s, axis=-1, keepdims=True))
        alpha = jnp.exp(m_prev - m_new)
        p = jnp.exp(s - m_new)
        l_ref[...] = alpha * l_ref[...] + jnp.sum(p, axis=-1, keepdims=True)
        pv = jnp.einsum("bde,beh->bdh", p.astype(enc.dtype), enc,
                        preferred_element_type=jnp.float32)
        acc_ref[...] = alpha * acc_ref[...] + pv
        m_ref[...] = m_new

        @pl.when(kv == pl.num_programs(2) - 1)
        def _finalize():
            # EUP reciprocal; ~1e-3 rel error, fine for this op's semantics.
            inv_l = pl.reciprocal(l_ref[...], approx=True)
            if acc_in_out:
                out_ref[...] = out_ref[...] * inv_l
            else:
                out_ref[...] = (acc_ref[...] * inv_l).astype(out_ref.dtype)

    return kernel


def _vmem_capacity_bytes():
    try:
        return int(pltpu.get_tpu_info().vmem_capacity_bytes)
    except Exception:
        return 64 * 1024 * 1024  # conservative, v7x-sized default


def _step_vmem_bytes(bb, bd, be, h, dec_item, enc_item, out_item,
                     enc_bufs, use_acc_scratch):
    hl = _round_up(h, 128)          # VMEM tiles are lane-padded to 128
    bd8 = _round_up(bd, 8)
    be8 = _round_up(be, 8)
    bel = _round_up(be, 128)
    dec_b = 2 * bb * bd8 * hl * dec_item          # double-buffered dec block
    enc_b = enc_bufs * bb * be8 * hl * enc_item   # 2- or 3-deep enc stream
    out_b = 2 * bb * bd8 * hl * out_item          # double-buffered out block
    ml_b = 2 * bb * bd8 * 128 * 4                 # m, l scratch (lane-padded)
    acc_b = bb * bd8 * hl * 4 if use_acc_scratch else 0
    tmp_b = 3 * bb * bd8 * bel * 4                # s, p + select/exp temps
    return dec_b + enc_b + out_b + ml_b + acc_b + tmp_b


def attention(enc_output, dec_output, *, block_b=None, block_d=None,
              block_e=None, enc_buffered=True, vmem_limit_bytes=None):
    """Pallas equivalent of Attention.forward.

    enc_output: (B, L_enc, H);  dec_output: (B, L_dec, H)  ->  c_t: (B, L_dec, H)
    """
    B, L_enc, H = enc_output.shape
    Bd, L_dec, Hd = dec_output.shape
    assert B == Bd and H == Hd, "batch / hidden dims must match"

    out_dtype = jnp.result_type(enc_output.dtype, dec_output.dtype)
    acc_in_out = out_dtype == jnp.float32      # accumulate straight into out block
    dec_item = jnp.dtype(dec_output.dtype).itemsize
    enc_item = jnp.dtype(enc_output.dtype).itemsize
    out_item = jnp.dtype(out_dtype).itemsize

    # ---- generation-aware VMEM budget -------------------------------------
    cap = _vmem_capacity_bytes()
    big_vmem = cap >= 100 * 1024 * 1024        # v5e / v6e (128 MiB physical)
    budget = (72 if big_vmem else 36) * 1024 * 1024
    if vmem_limit_bytes is None:
        vmem_limit_bytes = (96 if big_vmem else 46) * 1024 * 1024

    # ---- L_dec tile: extra "parallel" grid axis ----------------------------
    if block_d is None:
        block_d = L_dec if L_dec <= 256 else 256
    else:
        assert block_d == L_dec or block_d % 8 == 0

    # ---- L_enc tile: fixed size + cdiv grid + in-kernel tail mask ----------
    cap_e = 1024 if big_vmem else 512
    if block_e is None:
        block_e = L_enc if L_enc <= cap_e else cap_e
    else:
        assert block_e == L_enc or block_e % 8 == 0

    def fits(bb, be, bufs, bd):
        return _step_vmem_bytes(bb, bd, be, H, dec_item, enc_item, out_item,
                                bufs, not acc_in_out) <= budget

    # Rare fallback: shrink tiles until a single-batch step fits the budget.
    while not fits(1, block_e, 2, block_d) and block_e > 256:
        block_e = max(256, _round_up(block_e // 2, 8))
    while not fits(1, block_e, 2, block_d) and block_d > 64:
        block_d = max(64, _round_up(block_d // 2, 8))

    n_kv = _cdiv(L_enc, block_e)
    n_d = _cdiv(L_dec, block_d)
    mask_e = (n_kv * block_e) != L_enc

    # Triple-buffer the only per-kv-step-varying stream when it fits.
    enc_bufs = 3 if (enc_buffered and n_kv >= 3
                     and fits(1, block_e, 3, block_d)) else 2

    # ---- batch tile: amortize per-step overhead, keep >=2 parallel steps ---
    if block_b is None:
        divisors = [d for d in range(1, min(B, 8) + 1) if B % d == 0]
        chosen = None
        for bb in sorted(divisors, reverse=True):
            if fits(bb, block_e, enc_bufs, block_d) and (B // bb) * n_d >= 2:
                chosen = bb
                break
        if chosen is None:
            for bb in sorted(divisors, reverse=True):
                if fits(bb, block_e, enc_bufs, block_d):
                    chosen = bb
                    break
        block_b = chosen if chosen is not None else 1
    else:
        assert B % block_b == 0

    grid = (B // block_b, n_d, n_kv)

    kernel = _make_attention_kernel(block_e=block_e, l_enc=L_enc,
                                    mask_e=mask_e, acc_in_out=acc_in_out)

    def _enc_spec():
        shape = (block_b, block_e, H)
        index_map = lambda b, d, k: (b, k, 0)
        if enc_bufs > 2:
            try:
                return pl.BlockSpec(shape, index_map,
                                    pipeline_mode=pl.Buffered(enc_bufs))
            except (TypeError, AttributeError):
                pass
        return pl.BlockSpec(shape, index_map)

    scratch_shapes = [
        pltpu.VMEM((block_b, block_d, 1), jnp.float32),   # running max m
        pltpu.VMEM((block_b, block_d, 1), jnp.float32),   # running sum l
    ]
    if not acc_in_out:
        scratch_shapes.append(pltpu.VMEM((block_b, block_d, H), jnp.float32))

    return pl.pallas_call(
        kernel,
        out_shape=jax.ShapeDtypeStruct((B, L_dec, H), out_dtype),
        grid_spec=pltpu.PrefetchScalarGridSpec(
            num_scalar_prefetch=0,
            grid=grid,
            in_specs=[
                pl.BlockSpec((block_b, block_d, H), lambda b, d, k: (b, d, 0)),
                _enc_spec(),
            ],
            out_specs=pl.BlockSpec((block_b, block_d, H),
                                   lambda b, d, k: (b, d, 0)),
            scratch_shapes=scratch_shapes,
        ),
        compiler_params=pltpu.CompilerParams(
            dimension_semantics=("parallel", "parallel", "arbitrary"),
            vmem_limit_bytes=vmem_limit_bytes,
        ),
    )(dec_output, enc_output)


def _attention_ref(enc_output, dec_output):
    # Pure-JAX reference mirroring the PyTorch code.
    a_t = jnp.einsum("beh,bdh->bed", enc_output, dec_output)   # (B, L_enc, L_dec)
    a_t = jax.nn.softmax(a_t, axis=1)                          # softmax over L_enc
    c_t = jnp.einsum("bed,beh->bdh", a_t, enc_output)          # (B, L_dec, H)
    return c_t


if __name__ == "__main__":
    key = jax.random.PRNGKey(0)
    k1, k2, k3, k4, k5, k6 = jax.random.split(key, 6)

    # Test 1: toy shapes matching the module (single-tile path, f32 output
    # accumulated directly in the kv-resident output block).
    B, L_enc, L_dec, H = 2, 16, 8, 32
    enc = jax.random.normal(k1, (B, L_enc, H), dtype=jnp.float32)
    dec = jax.random.normal(k2, (B, L_dec, H), dtype=jnp.float32)
    out = jax.block_until_ready(attention(enc, dec))
    ref = _attention_ref(enc, dec)
    assert out.shape == (B, L_dec, H)
    assert jnp.allclose(out, ref, atol=2e-2, rtol=2e-2), "mismatch vs reference (test 1)"

    # Test 2: multi-tile online softmax with ragged L_enc tail masking, tiled
    # L_dec with a ragged tail, batched grid steps, 3-deep enc pipeline.
    B2, L_enc2, L_dec2, H2 = 4, 40, 24, 32
    enc2 = jax.random.normal(k3, (B2, L_enc2, H2), dtype=jnp.float32)
    dec2 = jax.random.normal(k4, (B2, L_dec2, H2), dtype=jnp.float32)
    out2 = jax.block_until_ready(
        attention(enc2, dec2, block_b=2, block_d=16, block_e=16))
    ref2 = _attention_ref(enc2, dec2)
    assert out2.shape == (B2, L_dec2, H2)
    assert jnp.allclose(out2, ref2, atol=2e-2, rtol=2e-2), "mismatch vs reference (test 2)"

    # Test 3: bf16 pass-through (bf16 MXU contractions, f32 scratch accumulator).
    B3, L_enc3, L_dec3, H3 = 2, 32, 8, 32
    enc3 = jax.random.normal(k5, (B3, L_enc3, H3), dtype=jnp.bfloat16)
    dec3 = jax.random.normal(k6, (B3, L_dec3, H3), dtype=jnp.bfloat16)
    out3 = jax.block_until_ready(attention(enc3, dec3, block_e=16))
    ref3 = _attention_ref(enc3.astype(jnp.float32), dec3.astype(jnp.float32))
    assert out3.shape == (B3, L_dec3, H3)
    assert jnp.allclose(out3.astype(jnp.float32), ref3, atol=5e-2, rtol=5e-2), \
        "mismatch vs reference (test 3)"

    print("KERNEL_OK")
</pallas_src>

<mosaic_0001>
module attributes {stable_mosaic.version = 11 : i64} {
  func.func @kernel(%arg0: i32, %arg1: i32, %arg2: i32, %arg3: memref<1x8x32xf32, #tpu.memory_space<vmem>>, %arg4: memref<1x16x32xf32, #tpu.memory_space<vmem>>, %arg5: memref<1x8x32xf32, #tpu.memory_space<vmem>>, %arg6: memref<1x8x1xf32, #tpu.memory_space<vmem>>, %arg7: memref<1x8x1xf32, #tpu.memory_space<vmem>>) attributes {dimension_semantics = [#tpu.dimension_semantics<parallel>, #tpu.dimension_semantics<parallel>, #tpu.dimension_semantics<arbitrary>], iteration_bounds = array<i64: 2, 1, 1>, scalar_prefetch = 0 : i64, scratch_operands = 2 : i64, tpu.core_type = #tpu.core_type<tc>, window_params = [{transform_indices = @transform_0, window_bounds = array<i64: 1, 8, 32>}, {transform_indices = @transform_1, window_bounds = array<i64: 1, 16, 32>}, {transform_indices = @transform_2, window_bounds = array<i64: 1, 8, 32>}]} {
    %c0_i32 = arith.constant 0 : i32
    %0 = arith.cmpi eq, %arg2, %c0_i32 : i32
    %1 = arith.extui %0 : i1 to i32
    %c0_i32_0 = arith.constant 0 : i32
    %2 = arith.cmpi ne, %1, %c0_i32_0 : i32
    scf.if %2 {
      %cst_29 = arith.constant 0xFF800000 : f32
      %31 = vector.broadcast %cst_29 : f32 to vector<1x8x1xf32>
      %c0_30 = arith.constant 0 : index
      %c0_31 = arith.constant 0 : index
      %c0_32 = arith.constant 0 : index
      %32 = vector.load %arg6[%c0_30, %c0_31, %c0_32] : memref<1x8x1xf32, #tpu.memory_space<vmem>>, vector<1x8x1xf32>
      tpu.vector_store %arg6[%c0_30, %c0_31, %c0_32], %31 {strides = array<i32>} : memref<1x8x1xf32, #tpu.memory_space<vmem>>, vector<1x8x1xf32>,
      %cst_33 = arith.constant 0.000000e+00 : f32
      %33 = vector.broadcast %cst_33 : f32 to vector<1x8x1xf32>
      %c0_34 = arith.constant 0 : index
      %c0_35 = arith.constant 0 : index
      %c0_36 = arith.constant 0 : index
      %34 = vector.load %arg7[%c0_34, %c0_35, %c0_36] : memref<1x8x1xf32, #tpu.memory_space<vmem>>, vector<1x8x1xf32>
      tpu.vector_store %arg7[%c0_34, %c0_35, %c0_36], %33 {strides = array<i32>} : memref<1x8x1xf32, #tpu.memory_space<vmem>>, vector<1x8x1xf32>,
      %cst_37 = arith.constant 0.000000e+00 : f32
      %35 = vector.broadcast %cst_37 : f32 to vector<1x8x32xf32>
      %c0_38 = arith.constant 0 : index
      %c0_39 = arith.constant 0 : index
      %c0_40 = arith.constant 0 : index
      %36 = vector.load %arg5[%c0_38, %c0_39, %c0_40] : memref<1x8x32xf32, #tpu.memory_space<vmem>>, vector<1x8x32xf32>
      tpu.vector_store %arg5[%c0_38, %c0_39, %c0_40], %35 {strides = array<i32>} : memref<1x8x32xf32, #tpu.memory_space<vmem>>, vector<1x8x32xf32>,
    } else {
    }
    %c0 = arith.constant 0 : index
    %c0_1 = arith.constant 0 : index
    %c0_2 = arith.constant 0 : index
    %3 = vector.load %arg3[%c0, %c0_1, %c0_2] : memref<1x8x32xf32, #tpu.memory_space<vmem>>, vector<1x8x32xf32>
    %c0_3 = arith.constant 0 : index
    %c0_4 = arith.constant 0 : index
    %c0_5 = arith.constant 0 : index
    %4 = vector.load %arg4[%c0_3, %c0_4, %c0_5] : memref<1x16x32xf32, #tpu.memory_space<vmem>>, vector<1x16x32xf32>
    "tpu.trace_start"() <{level = 10 : i32, message = "bdh,beh->bde"}> : () -> ()
    %cst = arith.constant dense<0.000000e+00> : vector<1x8x16xf32>
    %5 = tpu.matmul %3, %4, %cst {dimension_numbers = #tpu.dot_dimension_numbers<[2], [2], [1], [1], [0, 0, 0, 1, 1, 1], [0], [0]>} : vector<1x8x32xf32>, vector<1x16x32xf32>, vector<1x8x16xf32> -> vector<1x8x16xf32>
    "tpu.trace_stop"() : () -> ()
    %c0_6 = arith.constant 0 : index
    %c0_7 = arith.constant 0 : index
    %c0_8 = arith.constant 0 : index
    %6 = vector.load %arg6[%c0_6, %c0_7, %c0_8] : memref<1x8x1xf32, #tpu.memory_space<vmem>>, vector<1x8x1xf32>
    %cst_9 = arith.constant dense<0xFF800000> : vector<1x8xf32>
    %7 = vector.multi_reduction <maximumf>, %5, %cst_9 [2] : vector<1x8x16xf32> to vector<1x8xf32>
    %8 = vector.shape_cast %7 : vector<1x8xf32> to vector<1x8x1xf32>
    %9 = arith.maximumf %6, %8 : vector<1x8x1xf32>
    %10 = arith.subf %6, %9 : vector<1x8x1xf32>
    %11 = math.exp %10 : vector<1x8x1xf32>
    %12 = vector.broadcast %9 : vector<1x8x1xf32> to vector<1x8x16xf32>
    %13 = arith.subf %5, %12 : vector<1x8x16xf32>
    %14 = math.exp %13 : vector<1x8x16xf32>
    %c0_10 = arith.constant 0 : index
    %c0_11 = arith.constant 0 : index
    %c0_12 = arith.constant 0 : index
    %15 = vector.load %arg7[%c0_10, %c0_11, %c0_12] : memref<1x8x1xf32, #tpu.memory_space<vmem>>, vector<1x8x1xf32>
    %16 = arith.mulf %11, %15 : vector<1x8x1xf32>
    %cst_13 = arith.constant dense<0.000000e+00> : vector<1x8xf32>
    %17 = vector.multi_reduction <add>, %14, %cst_13 [2] : vector<1x8x16xf32> to vector<1x8xf32>
    %18 = vector.shape_cast %17 : vector<1x8xf32> to vector<1x8x1xf32>
    %19 = arith.addf %16, %18 : vector<1x8x1xf32>
    %c0_14 = arith.constant 0 : index
    %c0_15 = arith.constant 0 : index
    %c0_16 = arith.constant 0 : index
    %20 = vector.load %arg7[%c0_14, %c0_15, %c0_16] : memref<1x8x1xf32, #tpu.memory_space<vmem>>, vector<1x8x1xf32>
    tpu.vector_store %arg7[%c0_14, %c0_15, %c0_16], %19 {strides = array<i32>} : memref<1x8x1xf32, #tpu.memory_space<vmem>>, vector<1x8x1xf32>,
    "tpu.trace_start"() <{level = 10 : i32, message = "bde,beh->bdh"}> : () -> ()
    %cst_17 = arith.constant dense<0.000000e+00> : vector<1x8x32xf32>
    %21 = tpu.matmul %14, %4, %cst_17 {dimension_numbers = #tpu.dot_dimension_numbers<[2], [1], [1], [2], [0, 0, 0, 1, 1, 2], [0], [0]>} : vector<1x8x16xf32>, vector<1x16x32xf32>, vector<1x8x32xf32> -> vector<1x8x32xf32>
    "tpu.trace_stop"() : () -> ()
    %c0_18 = arith.constant 0 : index
    %c0_19 = arith.constant 0 : index
    %c0_20 = arith.constant 0 : index
    %22 = vector.load %arg5[%c0_18, %c0_19, %c0_20] : memref<1x8x32xf32, #tpu.memory_space<vmem>>, vector<1x8x32xf32>
    %23 = vector.broadcast %11 : vector<1x8x1xf32> to vector<1x8x32xf32>
    %24 = arith.mulf %23, %22 : vector<1x8x32xf32>
    %25 = arith.addf %24, %21 : vector<1x8x32xf32>
    %c0_21 = arith.constant 0 : index
    %c0_22 = arith.constant 0 : index
    %c0_23 = arith.constant 0 : index
    %26 = vector.load %arg5[%c0_21, %c0_22, %c0_23] : memref<1x8x32xf32, #tpu.memory_space<vmem>>, vector<1x8x32xf32>
    tpu.vector_store %arg5[%c0_21, %c0_22, %c0_23], %25 {strides = array<i32>} : memref<1x8x32xf32, #tpu.memory_space<vmem>>, vector<1x8x32xf32>,
    %c0_24 = arith.constant 0 : index
    %c0_25 = arith.constant 0 : index
    %c0_26 = arith.constant 0 : index
    %27 = vector.load %arg6[%c0_24, %c0_25, %c0_26] : memref<1x8x1xf32, #tpu.memory_space<vmem>>, vector<1x8x1xf32>
    tpu.vector_store %arg6[%c0_24, %c0_25, %c0_26], %9 {strides = array<i32>} : memref<1x8x1xf32, #tpu.memory_space<vmem>>, vector<1x8x1xf32>,
    %c0_i32_27 = arith.constant 0 : i32
    %28 = arith.cmpi eq, %arg2, %c0_i32_27 : i32
    %29 = arith.extui %28 : i1 to i32
    %c0_i32_28 = arith.constant 0 : i32
    %30 = arith.cmpi ne, %29, %c0_i32_28 : i32
    scf.if %30 {
      %c0_29 = arith.constant 0 : index
      %c0_30 = arith.constant 0 : index
      %c0_31 = arith.constant 0 : index
      %31 = vector.load %arg7[%c0_29, %c0_30, %c0_31] : memref<1x8x1xf32, #tpu.memory_space<vmem>>, vector<1x8x1xf32>
      %32 = tpu.reciprocal %31 {approx = true} : vector<1x8x1xf32> -> vector<1x8x1xf32>
      %c0_32 = arith.constant 0 : index
      %c0_33 = arith.constant 0 : index
      %c0_34 = arith.constant 0 : index
      %33 = vector.load %arg5[%c0_32, %c0_33, %c0_34] : memref<1x8x32xf32, #tpu.memory_space<vmem>>, vector<1x8x32xf32>
      %34 = vector.broadcast %32 : vector<1x8x1xf32> to vector<1x8x32xf32>
      %35 = arith.mulf %33, %34 : vector<1x8x32xf32>
      %c0_35 = arith.constant 0 : index
      %c0_36 = arith.constant 0 : index
      %c0_37 = arith.constant 0 : index
      %36 = vector.load %arg5[%c0_35, %c0_36, %c0_37] : memref<1x8x32xf32, #tpu.memory_space<vmem>>, vector<1x8x32xf32>
      tpu.vector_store %arg5[%c0_35, %c0_36, %c0_37], %35 {strides = array<i32>} : memref<1x8x32xf32, #tpu.memory_space<vmem>>, vector<1x8x32xf32>,
    } else {
    }
    return
  }
  func.func @transform_0(%arg0: i32, %arg1: i32, %arg2: i32) -> (i32, i32, i32) {
    %c0_i32 = arith.constant 0 : i32
    %c0_i32_0 = arith.constant 0 : i32
    return %arg0, %arg1, %c0_i32 : i32, i32, i32
  }
  func.func @transform_1(%arg0: i32, %arg1: i32, %arg2: i32) -> (i32, i32, i32) {
    %c0_i32 = arith.constant 0 : i32
    %c0_i32_0 = arith.constant 0 : i32
    return %arg0, %arg2, %c0_i32 : i32, i32, i32
  }
  func.func @transform_2(%arg0: i32, %arg1: i32, %arg2: i32) -> (i32, i32, i32) {
    %c0_i32 = arith.constant 0 : i32
    %c0_i32_0 = arith.constant 0 : i32
    return %arg0, %arg1, %c0_i32 : i32, i32, i32
  }
}

</mosaic_0001>

<bundles_post_ra>
// kernel: tpu_custom_call.1
= control target key start
LH: loop header
LB: loop body
LE: loop exit
PB: predicated region body
PF: predicated region fallthrough
CT: control target
= control target key end

     0   :  { %7 = vsyncpa [#allocation5], 0  ;;  %s1113_s0 = inlined_call_operand.hbm [shape: f32[2,8,32], index: 0, kind: input, shape index: {}]   ;;  %s1114_s1 = inlined_call_operand.hbm [shape: f32[2,16,32], index: 1, kind: input, shape index: {}]   ;;  %s1115_s2 = inlined_call_operand.hbm [shape: f32[2,8,32], index: 2, kind: output, shape index: {}]  }
   0x1   :  { %9 = vsyncpa [#allocation5 + $0x1], 0 }
   0x2   :  { %10 = vsyncpa [#allocation8], 0 }
   0x3   :  { %12 = vsyncpa [#allocation8 + $0x1], 0 }
   0x4   :  { %13 = vsyncpa [#allocation6], 0 }
   0x5   :  { %15 = vsyncpa [#allocation6 + $0x1], 0  ;;  %s869_s9 = smov 0   ;;  %s871_s10 = smov 0  }
   0x6   :  { %s873_s11 = smov 0   ;;  %s875_s12 = smov 0  }
   0x7   :  { %s877_s13 = smov 0   ;;  %s879_s14 = smov 0  }
   0x8 LB: > { %s565_s15 = sadd.s32 4294967295, %s842_s14   ;;  %s566_s16 = sadd.s32 4294967294, %s842_s14   ;;  %s842_s14 = sphi %s879_s14, %s21_s14   ;;  %s838_s13 = sphi %s877_s13, %s1134_s13   ;;  %s834_s12 = sphi %s875_s12, %s1133_s12   ;;  %s830_s11 = sphi %s873_s11, %s1132_s11   ;;  %s826_s10 = sphi %s871_s10, %s1131_s10   ;;  %s822_s9 = sphi %s869_s9, %s1130_s9  }
   0x9   : > { %s40_s17 = sadd.s32 1, %s838_s13  ;;  %s49_s18 = sadd.s32 1, %s830_s11 }
   0xa   : > { %p42_p0 = scmp.ge.s32.totalorder %s40_s17, 2  ;;  %p56_p1 = scmp.ne.s32.totalorder %s830_s11, %s826_s10 }
   0xb   : > { %p57_p2 = scmp.eq.s32.totalorder %s842_s14, 0  ;;  %p62_p3 = scmp.ne.s32.totalorder %s826_s10, %s822_s9 }
   0xc   : > { %s1136_s17 = smov (%p42_p0, %s40_s17), 0  ;;  %p63_p5 = scmp.eq.s32.totalorder %s565_s15, 0 }
   0xd   : > { %p910_p4 = por %p57_p2, %p56_p1  ;;  %s44_s20 = ssub.s32 %s838_s13, %s1136_s17 }
   0xe   : > { %p116_p6 = scmp.eq.s32.totalorder %s565_s15, 1  ;;  %p47_p7 = scmp.eq.s32.totalorder %s44_s20, 0 }
   0xf   : > { %p916_p8 = por %p63_p5, %p62_p3  ;;  %p122_p10 = scmp.eq.s32.totalorder %s566_s16, 1 }
  0x10   : > { %p920_p9 = por %p116_p6, %p56_p1  ;;  %p631_p13 = scmp.lt.s32.totalorder %s842_s14, 2 }
  0x11   : > { %s1119_s21 = scalar_select %p916_p8, 1, 0 }
  0x12   : > { %s1120_s22 = scalar_select %p920_p9, 1, 0 }
  0x13   : > { %s925_s23 = scalar_select %p47_p7, %s830_s11, %s49_s18  }
  0x14   : > { %p927_p11 = por %p122_p10, %p62_p3  ;;  %s934_s25 = sand.u32 1, %s830_s11  }
  0x15   : > { %s569_s26 = sshll.u32 %s934_s25, 3  ;;  %s570_s27 = sshll.u32 %s838_s13, 7 }
  0x16   : > { %s1121_s24 = scalar_select %p927_p11, 1, 0 }
  0x17   : > { %s941_s30 = scalar_lea.hbm %s1113_s0, %s570_s27  ;;  %s146_s3 = scalar_lea.vmem [#allocation4], %s569_s26 }
  0x18   : > { %s154_s4 = sshll.u32 %s146_s3, 4  ;;  %p947_p0 = pnand %p631_p13, %p910_p4  ;;  %s943_s4 = int_to_ptr.vmem [resolvable:$true] %s154_s4 }
  0x19   : > { %s143_s6 = scalar_lea.sflag [#allocation5], %s934_s25  ;;  %s696_s7 = scalar_lea.hbm %s941_s30, 128 }
  0x1a   : > { %p697_p3 = scmp.ne.s32.totalorder %s941_s30, %s696_s7  ;;  %p698_p5 = pneg %p947_p0 }
  0x1b   : > { %s701_s16 = scalar_lea.hbm %s1113_s0, 256  ;;  %p702_p4 = scmp.lt.u32.totalorder %s941_s30, %s1113_s0 }
  0x1c   : > { %p699_p6 = pnand %p698_p5, %p697_p3  ;;  %p703_p10 = scmp.lt.u32.totalorder %s701_s16, %s696_s7 }
  0x1d   : > { %p705_p12 = scmp.lt.u32.totalorder %s696_s7, %s941_s30 }
  0x1e   : > { %p700_p7 = pneg %p699_p6  ;;  %p704_p13 = por %p703_p10, %p702_p4 }
  0x20   : > { %p706_p1 = por %p705_p12, %p704_p13 }
  0x22   : > { %p707_p2 = pnand %p706_p1, %p700_p7 }
  0x24   : > { %710 = shalt.err (!%p707_p2)
}
  0x25   : > { %s711_s20 = scalar_lea.vmem %s943_s4, 128  ;;  %s844_s26 = smov [#allocation4]  }
  0x26   : > { %p712_p3 = scmp.ne.s32.totalorder %s943_s4, %s711_s20  ;;  %s716_s27 = sshll.u32 %s844_s26, 4  ;;  %s717_s27 = int_to_ptr.vmem [resolvable:$false] %s716_s27 }
  0x27   : > { %s718_s28 = scalar_lea.vmem %s717_s27, 256  ;;  %p719_p9 = scmp.lt.s32.totalorder %s943_s4, %s717_s27 }
  0x28   : > { %p714_p6 = pnand %p712_p3, %p698_p5  ;;  %p720_p4 = scmp.lt.s32.totalorder %s718_s28, %s711_s20 }
  0x2a   : > { %p715_p11 = pneg %p714_p6  ;;  %p721_p10 = por %p720_p4, %p719_p9 }
  0x2c   : > { %p722_p12 = pnand %p721_p10, %p715_p11 }
  0x2e   : > { %725 = shalt.err (!%p722_p12)
}
  0x2f   : > { %623 = dma.hbm_to_vmem [thread:$0]  (!%p947_p0), %s941_s30, 128, %s943_s4, %s143_s6  }
  0x30   : > { %p1123_p1 = scmp.lt.s32.totalorder %s842_s14, 3  ;;  %p1124_p2 = scmp.ge.s32.totalorder %s842_s14, 1 }
  0x31   : > { %s571_s3 = sshll.u32 %s934_s25, 4  ;;  %s586_s7 = sshll.u32 %s838_s13, 8 }
  0x32   : > { %p983_p7 = pnand %p1124_p2, %p1123_p1  ;;  %s992_s16 = scalar_lea.hbm %s1114_s1, %s586_s7 }
  0x33   : > { %s165_s18 = scalar_lea.vmem [#allocation7], %s571_s3  ;;  %s162_s30 = scalar_lea.sflag [#allocation8], %s934_s25 }
  0x34   : > { %s174_s19 = sshll.u32 %s165_s18, 4  ;;  %s726_s4 = scalar_lea.hbm %s992_s16, 256  ;;  %s994_s19 = int_to_ptr.vmem [resolvable:$true] %s174_s19 }
  0x35   : > { %p727_p9 = scmp.ne.s32.totalorder %s992_s16, %s726_s4  ;;  %s731_s26 = scalar_lea.hbm %s1114_s1, 512 }
  0x36   : > { %p732_p3 = scmp.lt.u32.totalorder %s992_s16, %s1114_s1  ;;  %p733_p6 = scmp.lt.u32.totalorder %s731_s26, %s726_s4 }
  0x37   : > { %p729_p11 = pnand %p727_p9, %p698_p5  ;;  %p735_p10 = scmp.lt.u32.totalorder %s726_s4, %s992_s16 }
  0x38   : > { %p734_p4 = por %p733_p6, %p732_p3 }
  0x39   : > { %p730_p13 = pneg %p729_p11 }
  0x3a   : > { %p736_p12 = por %p735_p10, %p734_p4 }
  0x3c   : > { %p737_p1 = pnand %p736_p12, %p730_p13 }
  0x3e   : > { %740 = shalt.err (!%p737_p1)
}
  0x3f   : > { %s741_s3 = scalar_lea.vmem %s994_s19, 256  ;;  %s845_s7 = smov [#allocation7]  }
  0x40   : > { %p742_p2 = scmp.ne.s32.totalorder %s994_s19, %s741_s3  ;;  %s746_s8 = sshll.u32 %s845_s7, 4  ;;  %s747_s8 = int_to_ptr.vmem [resolvable:$false] %s746_s8 }
  0x41   : > { %s748_s15 = scalar_lea.vmem %s747_s8, 512  ;;  %p749_p8 = scmp.lt.s32.totalorder %s994_s19, %s747_s8 }
  0x42   : > { %p744_p9 = pnand %p742_p2, %p698_p5  ;;  %p750_p3 = scmp.lt.s32.totalorder %s748_s15, %s741_s3 }
  0x44   : > { %p745_p11 = pneg %p744_p9  ;;  %p751_p6 = por %p750_p3, %p749_p8 }
  0x46   : > { %p752_p4 = pnand %p751_p6, %p745_p11 }
  0x48   : > { %755 = shalt.err (!%p752_p4)
}
  0x49   : > { %s846_s18 = smov 128   ;;  %s847_s4 = smov 8  }
  0x4a   : > { %626 = dma.hbm_to_vmem [thread:$0]  (!%p947_p0), %s992_s16, 256, %s994_s19, %s162_s30, %s846_s18, %s846_s18, %s847_s4  }
  0x4b   : > { %186 = sbr.rel (%p983_p7) target bundleno = 905 (0x389), region = 28  ;;  %s1025_s6 = sand.u32 (!%p983_p7), 1, %s826_s10  }
  0x4c   : > { %s575_s20 = sshll.u32 (!%p983_p7), %s1025_s6, 3  ;;  %s189_s26 = scalar_lea.sflag (!%p983_p7), [#allocation5], %s1025_s6 }
  0x4d   : > { %s192_s27 = scalar_lea.vmem (!%p983_p7), [#allocation4], %s575_s20  ;;  %p1126_p8 = scmp.ne.s32.totalorder (!%p983_p7), %s1119_s21, 0 }
  0x52   : > { %809 = dma.done.wait (%p1126_p8), %s189_s26, 128  }
  0x53   : > { %811 = vsyncadd (%p1126_p8), %s189_s26, 4294967168  ;;  %s576_s25 = sshll.u32 %s1025_s6, 4  ;;  %s198_s5 = scalar_lea.sflag [#allocation8], %s1025_s6 }
  0x54   : > { %s201_s29 = scalar_lea.vmem [#allocation7], %s576_s25 }
  0x55   : > { %813 = dma.done.wait (%p1126_p8), %s198_s5, 256  }
  0x56   : > { %815 = vsyncadd (%p1126_p8), %s198_s5, 4294967040  ;;  %vm235_vm0 = vcmask 261120   ;;  %vm232_vm1 = vcmask 7168   ;;  %v848_v0 = vmov 0.0|0.0   ;;  %v849_v1 = vmov 0.0   ;;  %s1040_s16 = scalar_lea.vmem [#allocation9], %s575_s20 }
  0x57   : > { %607 = vmatprep.subr.bf16.mxu0 %v848_v0  ;;  %234 = vst.msk [vmem:[#allocation3] sm:$0xff] %vm232_vm1, %v849_v1  ;;  %611 = vmatprep.subr.bf16.mxu1 %v848_v0  ;;  %vm850_vm2 = vmmov 0   ;;  %v238_v2 = vld [vmem:[%s201_s29] sm:$0xff]  ;;  %v239_v3 = vld [vmem:[%s201_s29 + $0x8] sm:$0xff]  ;;  %vm609_vm3 = vmpackc.low %vm235_vm0, %vm235_vm0  ;;  %v851_v6 = vmov -inf   ;;  %vm321_vm4 = vcmask 130048  }
  0x58   : > { %236 = vst.msk [vmem:[%s1040_s16] sm:$0xff] %vm235_vm0, %v849_v1  ;;  %597 = vmatprep.mubr.msk.f32.mxu0 %vm850_vm2, %v849_v1  ;;  %604 = vmatprep.mubr.msk.f32.mxu1 %vm850_vm2, %v849_v1  ;;  %v608_v4 = vpack.c.bf16 %v239_v3, %v238_v2  ;;  %v237_v5 = vld [vmem:[%s192_s27] sm:$0xff]  ;;  %v852_v10 = vmov 0   ;;  %s583_s21 = sshll.u32 %s834_s12, 7  ;;  %s456_s19 = sshll.u32 %s1040_s16, 4  ;;  %s1064_s19 = int_to_ptr.vmem [resolvable:$true] %s456_s19 }
  0x59   : > { %233 = vst.msk [vmem:[#allocation2] sm:$0xff] %vm232_vm1, %v851_v6  ;;  %688 = vset.pattern.permute.xlu0 %v852_v10  ;;  %689 = vset.pattern.permute.xlu1 %v852_v10  ;;  %s1062_s3 = scalar_lea.hbm %s1115_s2, %s583_s21  ;;  %s442_s7 = scalar_lea.sflag [#allocation6], %s1025_s6 }
  0x5a   : > { %610 = vmatpush3.bf16.xpose.msk.msra.mxu0 %vm609_vm3, %v608_v4  ;;  %613 = vmatpush3.bf16.msra.mxu1 %v608_v4  ;;  %s756_s8 = scalar_lea.vmem %s1064_s19, 128  ;;  %p1127_p5 = scmp.ne.s32.totalorder %s1120_s22, 0 }
  0x5b   : > { %p757_p0 = scmp.ne.s32.totalorder %s1064_s19, %s756_s8  ;;  %s853_s12 = smov [#allocation9]  }
  0x5c   : > { %s760_s15 = sshll.u32 %s853_s12, 4  ;;  %s761_s15 = int_to_ptr.vmem [resolvable:$false] %s760_s15 }
  0x5d   : > { %p758_p7 = pnand %p757_p0, %p1127_p5  ;;  %s762_s18 = scalar_lea.vmem %s761_s15, 256 }
  0x5e   : > { %v337_v22 = vld [vmem:[#allocation3] sm:$0xff]  ;;  %p763_p10 = scmp.lt.s32.totalorder %s1064_s19, %s761_s15  ;;  %p764_p12 = scmp.lt.s32.totalorder %s762_s18, %s756_s8 }
  0x5f   : > { %v418_v28 = vld [vmem:[%s1040_s16] sm:$0xff]  ;;  %p759_p13 = pneg %p758_p7 }
  0x60   : > { %v320_v11 = vld [vmem:[#allocation2] sm:$0xff]  ;;  %p765_p1 = por %p764_p12, %p763_p10 }
  0x61   : > { %598 = vmatmul.mubr.msk.f32.vlgmr.msra.gmra.mrb[0].mxu0 %vm235_vm0, %v237_v5 }
  0x62   : > { %p766_p2 = pnand %p765_p1, %p759_p13 }
 0x134   : > { %v316_v7 = vpop.f32.mrb[0].mxu0 }
 0x135   : > { %v599_v8 = vpop.f32.mrb[1].mxu0  ;;  %v322_v9 = vsel %vm321_vm4, %v316_v7, -inf }
 0x136   : > { %323 = vmax.xlane.f32.xlu0 %v322_v9 }
 0x1c3   : > { %v324_v12 = vpop.xlane.xlu0 %323 }
 0x1c4   : > { %v325_v13 = vmax.f32 %v320_v11, %v324_v12 }
 0x1c6   : > { %v326_v14 = vsub.f32 %v320_v11, %v325_v13  ;;  %427 = vst.msk [vmem:[#allocation2] sm:$0xff] %vm232_vm1, %v325_v13  ;;  %331 = vperm.xlu0 %688, %v325_v13  }
 0x1c8   : > { %v327_v20 = vmul.f32 1.442695, %v326_v14 }
 0x245   : > { %v332_v15 = vpop.permute.xlu0 %331 }
 0x246   : > { %v334_v16 = vsub.f32 %v316_v7, %v332_v15 }
 0x248   : > { %v335_v17 = vmul.f32 1.442695, %v334_v16 }
 0x24a   : > { %690 = vpow2.f32 %v335_v17 }
 0x24b   : > { %692 = vpow2.f32 %v327_v20 }
 0x254   : > { %v691_v18 = vpop.eup %690 }
 0x255   : > { %605 = vmatmul.mubr.msk.f32.vlgmr.msra.gmra.mrb[0].mxu1 %vm321_vm4, %v691_v18  ;;  %v339_v19 = vsel %vm321_vm4, %v691_v18, 0.0  ;;  %v693_v21 = vpop.eup %692 }
 0x256   : > { %340 = vadd.xlane.f32.xlu1 %v339_v19  ;;  %v338_v23 = vmul.f32 %v693_v21, %v337_v22 }
 0x267   : > { %421 = vperm.xlu1 %689, %v693_v21  }
 0x2e3   : > { %v341_v24 = vpop.xlane.xlu1 %340 }
 0x2e4   : > { %v342_v25 = vadd.f32 %v341_v24, %v338_v23 }
 0x2e6   : > { %344 = vst.msk [vmem:[#allocation3] sm:$0xff] %vm232_vm1, %v342_v25 }
 0x2e7   : > { %v422_v29 = vpop.permute.xlu1 %421 }
 0x2e8   : > { %v424_v30 = vmul.f32 %v422_v29, %v418_v28 }
 0x2ed   : > { %v431_v26 = vld [vmem:[#allocation3] sm:$0xff] }
 0x2ee   : > { %694 = vrcp.f32 %v431_v26 }
 0x2f8   : > { %v695_v27 = vpop.eup %694 }
 0x2f9   : > { %436 = vperm.xlu1 %689, %v695_v27  }
 0x328   : > { %v414_v31 = vpop.f32.mrb[0].mxu1 }
 0x329   : > { %v425_v32 = vadd.f32 %v424_v30, %v414_v31  ;;  %v606_v33 = vpop.f32.mrb[1].mxu1 }
 0x32b   : > { %426 = vst.msk [vmem:[%s1040_s16] sm:$0xff] %vm235_vm0, %v425_v32 }
 0x332   : > { %v433_v34 = vld [vmem:[%s1040_s16] sm:$0xff] }
 0x378   : > { %v437_v35 = vpop.permute.xlu1 %436 }
 0x379   : > { %v439_v36 = vmul.f32 %v437_v35, %v433_v34 }
 0x37b   : > { %440 = vst.msk [vmem:[%s1040_s16] sm:$0xff] %vm235_vm0, %v439_v36 }
 0x37c   : > { %769 = shalt.err (!%p766_p2)
}
 0x37d   : > { %s770_s4 = scalar_lea.hbm %s1062_s3, 128  ;;  %s774_s26 = scalar_lea.hbm %s1115_s2, 256 }
 0x37e   : > { %p771_p9 = scmp.ne.s32.totalorder %s1062_s3, %s770_s4  ;;  %p775_p6 = scmp.lt.u32.totalorder %s1062_s3, %s1115_s2 }
 0x37f   : > { %p776_p4 = scmp.lt.u32.totalorder %s774_s26, %s770_s4  ;;  %p778_p0 = scmp.lt.u32.totalorder %s770_s4, %s1062_s3 }
 0x380   : > { %p772_p11 = pnand %p771_p9, %p1127_p5 }
 0x381   : > { %p777_p8 = por %p776_p4, %p775_p6 }
 0x382   : > { %p773_p3 = pneg %p772_p11 }
 0x383   : > { %p779_p7 = por %p778_p0, %p777_p8 }
 0x385   : > { %p780_p13 = pnand %p779_p7, %p773_p3 }
 0x387   : > { %783 = shalt.err (!%p780_p13)
}
 0x388   : > { %618 = dma.vmem_to_hbm [thread:$0]  (%p1127_p5), %s1064_s19, 128, %s1062_s3, %s442_s7  }
 0x389 PF: > { %s468_s5 = sand.u32 1, %s822_s9   ;;  %p1128_p10 = scmp.ne.s32.totalorder %s1121_s24, 0 }
 0x38a   : > { %p1129_p12 = scmp.ge.s32.totalorder %s842_s14, 2  ;;  %s469_s29 = scalar_lea.sflag [#allocation6], %s468_s5 }
 0x38c   : > { %p628_p1 = pnand %p1129_p12, %p1128_p10 }
 0x38e   : > { %817 = dma.done.wait (!%p628_p1), %s469_s29, 128  }
 0x38f   : > { %819 = vsyncadd (!%p628_p1), %s469_s29, 4294967168  ;;  %s21_s14 = sadd.s32 1, %s842_s14   ;;  %s1130_s9 = smov %s826_s10 }
 0x390   : > { %p18_p2 = scmp.ge.s32.totalorder %s21_s14, 4   ;;  %s1131_s10 = smov %s830_s11 }
 0x391   : > { %s1132_s11 = smov %s925_s23  ;;  %s1133_s12 = smov %s838_s13 }
 0x392   : > { %s1134_s13 = smov %s1136_s17  ;;  %20 = sbr.rel (!%p18_p2) target bundleno = 8 (0x8), region = 94 }
 0x399   :  { %474 = vsyncpa [#allocation5], 1 }
 0x39a   :  { %476 = vsyncpa [#allocation5 + $0x1], 1 }
 0x39b   :  { %477 = vsyncpa [#allocation8], 1 }
 0x39c   :  { %479 = vsyncpa [#allocation8 + $0x1], 1 }
 0x39d   :  { %480 = vsyncpa [#allocation6], 1 }
 0x39e   :  { %482 = vsyncpa [#allocation6 + $0x1], 1 }

</bundles_post_ra>
